<compile_context>
chip_gen: v6e
topology: v6e:2x2x1
jax: 0.10.0
libtpu: 0.0.40
codegen_flags: <defaults>
</compile_context>

<pallas_src>
import functools

import jax
import jax.numpy as jnp
from jax.experimental import pallas as pl
from jax.experimental.pallas import tpu as pltpu


def _actor_kernel(num_layers, xt_ref, *refs):
    """refs = (W1, b1, ..., WL, bL, out_ref); W as [out, in], b as [out, 1].

    xt_ref is the transposed obs tile [dim_obs, tile_b]; everything stays in
    the lane-dense [features, batch] layout: h_l = tanh(W_l @ h_{l-1} + b_l).
    The last layer is the mean head (also tanh'd, per the PyTorch spec).
    """
    params = refs[:-1]
    out_ref = refs[-1]
    dot = functools.partial(
        jnp.dot,
        preferred_element_type=jnp.float32,
        precision=jax.lax.Precision.HIGHEST,
    )
    h = xt_ref[...]                               # [dim_obs, tile_b]
    for l in range(num_layers):
        w = params[2 * l][...]                    # [out, in]
        b = params[2 * l + 1][...]                # [out, 1] -> broadcast lanes
        h = jnp.tanh(dot(w, h) + b)               # [out, tile_b]  (MXU + EUP)
    out_ref[...] = h                              # [dim_action, tile_b]


def _select_tile_b(batch, max_tile=1024):
    """Lane-dense batch tile: multiple of 128, capped at max_tile, and kept
    small enough that the grid has >= 2 steps when the batch allows it (so
    both v7x TensorCores are used via the parallel batch axis)."""
    n128 = pl.cdiv(batch, 128)
    if n128 >= 2:
        return max(128, min(max_tile, (n128 // 2) * 128))
    return 128


def actor_forward(obs, params, *, max_tile_b=1024):
    """obs: [B, dim_obs] f32.  params: flat list [W1, b1, ..., Wm, bm] with W
    in PyTorch layout [out, in] and b as [out, 1].  Returns mean [B, dim_action].
    """
    num_layers = len(params) // 2
    batch, dim_obs = obs.shape
    dim_action = params[-2].shape[0]

    tile_b = _select_tile_b(batch, max_tile_b)
    grid = (pl.cdiv(batch, tile_b),)

    # Lane-dense [features, batch] layout: tiny wrapper-side transpose of obs
    # (layout plumbing only); kernel output comes back as [dim_action, B].
    obs_t = obs.T                                 # [dim_obs, B]

    obs_spec = pl.BlockSpec((dim_obs, tile_b), lambda i: (0, i))
    out_spec = pl.BlockSpec((dim_action, tile_b), lambda i: (0, i))
    # Weights/biases: full-array blocks with constant index_map -> DMA'd once,
    # VMEM-resident across all grid steps.
    param_specs = [pl.BlockSpec(p.shape, lambda i: (0, 0)) for p in params]

    kernel = functools.partial(_actor_kernel, num_layers)
    out_t = pl.pallas_call(
        kernel,
        grid=grid,
        out_shape=jax.ShapeDtypeStruct((dim_action, batch), jnp.float32),
        in_specs=[obs_spec] + param_specs,
        out_specs=out_spec,
        compiler_params=pltpu.CompilerParams(
            dimension_semantics=("parallel",)),
    )(obs_t, *params)
    return out_t.T                                # [B, dim_action]


def init_params(key, dim_obs, dim_action, dims_hidden=(64, 64)):
    """Deterministic init matching the PyTorch module's scheme (float32).
    Weights in PyTorch nn.Linear layout [out, in]; biases as [out, 1]."""
    n_neurons = (dim_obs,) + tuple(dims_hidden) + (dim_action,)
    keys = jax.random.split(key, len(dims_hidden) + 2)
    params = []
    # Hidden layers: xavier_uniform weights, zero bias.
    for i, (d_in, d_out) in enumerate(zip(n_neurons[:-2], n_neurons[1:-1])):
        limit = jnp.sqrt(6.0 / (d_in + d_out))
        w = jax.random.uniform(keys[i], (d_out, d_in), jnp.float32, -limit, limit)
        b = jnp.zeros((d_out, 1), jnp.float32)
        params += [w, b]
    # Mean head: uniform(-0.003, 0.003) for weight and bias.
    d_last = n_neurons[-2]
    wm = jax.random.uniform(keys[-2], (dim_action, d_last), jnp.float32, -0.003, 0.003)
    bm = jax.random.uniform(keys[-1], (dim_action, 1), jnp.float32, -0.003, 0.003)
    params += [wm, bm]
    return params


def reference_forward(obs, params):
    """Plain-JAX reference of Actor.forward: x = tanh(x @ W^T + b) per layer."""
    num_layers = len(params) // 2
    dot = functools.partial(jnp.dot, precision=jax.lax.Precision.HIGHEST,
                            preferred_element_type=jnp.float32)
    x = obs
    for l in range(num_layers):
        w = params[2 * l]                         # [out, in]
        b = params[2 * l + 1]                     # [out, 1]
        x = jnp.tanh(dot(x, w.T) + b[:, 0])
    return x


if __name__ == "__main__":
    dim_obs, dim_action, dims_hidden = 16, 8, (64, 64)
    batch = 256      # -> 2 lane-dense 128-wide grid steps (both TCs on v7x)

    key = jax.random.PRNGKey(0)
    k_obs, k_params = jax.random.split(key)
    obs = jax.random.normal(k_obs, (batch, dim_obs), jnp.float32)
    params = init_params(k_params, dim_obs, dim_action, dims_hidden)

    mean = actor_forward(obs, params)
    jax.block_until_ready(mean)

    mean_ref = reference_forward(obs, params)
    assert mean.shape == (batch, dim_action)
    assert jnp.allclose(mean, mean_ref, atol=1e-4, rtol=1e-4)
    assert float(jnp.abs(mean).max()) <= 1.0      # tanh output range

    print("KERNEL_OK")
</pallas_src>

<mosaic_0001>
module attributes {stable_mosaic.version = 11 : i64} {
  func.func @_actor_kernel(%arg0: i32, %arg1: memref<16x128xf32, #tpu.memory_space<vmem>>, %arg2: memref<64x16xf32, #tpu.memory_space<vmem>>, %arg3: memref<64x1xf32, #tpu.memory_space<vmem>>, %arg4: memref<64x64xf32, #tpu.memory_space<vmem>>, %arg5: memref<64x1xf32, #tpu.memory_space<vmem>>, %arg6: memref<8x64xf32, #tpu.memory_space<vmem>>, %arg7: memref<8x1xf32, #tpu.memory_space<vmem>>, %arg8: memref<8x128xf32, #tpu.memory_space<vmem>>) attributes {dimension_semantics = [#tpu.dimension_semantics<parallel>], iteration_bounds = array<i64: 2>, scalar_prefetch = 0 : i64, scratch_operands = 0 : i64, tpu.core_type = #tpu.core_type<tc>, window_params = [{transform_indices = @transform_0, window_bounds = array<i64: 16, 128>}, {pipeline_mode = #tpu.pipeline_mode<synchronous>, transform_indices = @transform_1, window_bounds = array<i64: 64, 16>}, {pipeline_mode = #tpu.pipeline_mode<synchronous>, transform_indices = @transform_2, window_bounds = array<i64: 64, 1>}, {pipeline_mode = #tpu.pipeline_mode<synchronous>, transform_indices = @transform_3, window_bounds = array<i64: 64, 64>}, {pipeline_mode = #tpu.pipeline_mode<synchronous>, transform_indices = @transform_4, window_bounds = array<i64: 64, 1>}, {pipeline_mode = #tpu.pipeline_mode<synchronous>, transform_indices = @transform_5, window_bounds = array<i64: 8, 64>}, {pipeline_mode = #tpu.pipeline_mode<synchronous>, transform_indices = @transform_6, window_bounds = array<i64: 8, 1>}, {transform_indices = @transform_7, window_bounds = array<i64: 8, 128>}]} {
    %c0 = arith.constant 0 : index
    %c0_0 = arith.constant 0 : index
    %0 = vector.load %arg1[%c0, %c0_0] : memref<16x128xf32, #tpu.memory_space<vmem>>, vector<16x128xf32>
    %c0_1 = arith.constant 0 : index
    %c0_2 = arith.constant 0 : index
    %1 = vector.load %arg2[%c0_1, %c0_2] : memref<64x16xf32, #tpu.memory_space<vmem>>, vector<64x16xf32>
    %c0_3 = arith.constant 0 : index
    %c0_4 = arith.constant 0 : index
    %2 = vector.load %arg3[%c0_3, %c0_4] : memref<64x1xf32, #tpu.memory_space<vmem>>, vector<64x1xf32>
    %cst = arith.constant dense<0.000000e+00> : vector<64x128xf32>
    %3 = tpu.matmul %1, %0, %cst {dimension_numbers = #tpu.dot_dimension_numbers<[1], [0], [0], [1], [0, 0, 1, 1], [], []>, precision = #tpu.contract_precision<fp32>} : vector<64x16xf32>, vector<16x128xf32>, vector<64x128xf32> -> vector<64x128xf32>
    %4 = vector.broadcast %2 : vector<64x1xf32> to vector<64x128xf32>
    %5 = arith.addf %3, %4 : vector<64x128xf32>
    %6 = math.tanh %5 : vector<64x128xf32>
    %c0_5 = arith.constant 0 : index
    %c0_6 = arith.constant 0 : index
    %7 = vector.load %arg4[%c0_5, %c0_6] : memref<64x64xf32, #tpu.memory_space<vmem>>, vector<64x64xf32>
    %c0_7 = arith.constant 0 : index
    %c0_8 = arith.constant 0 : index
    %8 = vector.load %arg5[%c0_7, %c0_8] : memref<64x1xf32, #tpu.memory_space<vmem>>, vector<64x1xf32>
    %cst_9 = arith.constant dense<0.000000e+00> : vector<64x128xf32>
    %9 = tpu.matmul %7, %6, %cst_9 {dimension_numbers = #tpu.dot_dimension_numbers<[1], [0], [0], [1], [0, 0, 1, 1], [], []>, precision = #tpu.contract_precision<fp32>} : vector<64x64xf32>, vector<64x128xf32>, vector<64x128xf32> -> vector<64x128xf32>
    %10 = vector.broadcast %8 : vector<64x1xf32> to vector<64x128xf32>
    %11 = arith.addf %9, %10 : vector<64x128xf32>
    %12 = math.tanh %11 : vector<64x128xf32>
    %c0_10 = arith.constant 0 : index
    %c0_11 = arith.constant 0 : index
    %13 = vector.load %arg6[%c0_10, %c0_11] : memref<8x64xf32, #tpu.memory_space<vmem>>, vector<8x64xf32>
    %c0_12 = arith.constant 0 : index
    %c0_13 = arith.constant 0 : index
    %14 = vector.load %arg7[%c0_12, %c0_13] : memref<8x1xf32, #tpu.memory_space<vmem>>, vector<8x1xf32>
    %cst_14 = arith.constant dense<0.000000e+00> : vector<8x128xf32>
    %15 = tpu.matmul %13, %12, %cst_14 {dimension_numbers = #tpu.dot_dimension_numbers<[1], [0], [0], [1], [0, 0, 1, 1], [], []>, precision = #tpu.contract_precision<fp32>} : vector<8x64xf32>, vector<64x128xf32>, vector<8x128xf32> -> vector<8x128xf32>
    %16 = vector.broadcast %14 : vector<8x1xf32> to vector<8x128xf32>
    %17 = arith.addf %15, %16 : vector<8x128xf32>
    %18 = math.tanh %17 : vector<8x128xf32>
    %c0_15 = arith.constant 0 : index
    %c0_16 = arith.constant 0 : index
    %19 = vector.load %arg8[%c0_15, %c0_16] : memref<8x128xf32, #tpu.memory_space<vmem>>, vector<8x128xf32>
    tpu.vector_store %arg8[%c0_15, %c0_16], %18 {strides = array<i32>} : memref<8x128xf32, #tpu.memory_space<vmem>>, vector<8x128xf32>,
    return
  }
  func.func @transform_0(%arg0: i32) -> (i32, i32) {
    %c0_i32 = arith.constant 0 : i32
    %c0_i32_0 = arith.constant 0 : i32
    return %c0_i32, %arg0 : i32, i32
  }
  func.func @transform_1(%arg0: i32) -> (i32, i32) {
    %c0_i32 = arith.constant 0 : i32
    %c0_i32_0 = arith.constant 0 : i32
    %c0_i32_1 = arith.constant 0 : i32
    return %c0_i32, %c0_i32_0 : i32, i32
  }
  func.func @transform_2(%arg0: i32) -> (i32, i32) {
    %c0_i32 = arith.constant 0 : i32
    %c0_i32_0 = arith.constant 0 : i32
    %c0_i32_1 = arith.constant 0 : i32
    return %c0_i32, %c0_i32_0 : i32, i32
  }
  func.func @transform_3(%arg0: i32) -> (i32, i32) {
    %c0_i32 = arith.constant 0 : i32
    %c0_i32_0 = arith.constant 0 : i32
    %c0_i32_1 = arith.constant 0 : i32
    return %c0_i32, %c0_i32_0 : i32, i32
  }
  func.func @transform_4(%arg0: i32) -> (i32, i32) {
    %c0_i32 = arith.constant 0 : i32
    %c0_i32_0 = arith.constant 0 : i32
    %c0_i32_1 = arith.constant 0 : i32
    return %c0_i32, %c0_i32_0 : i32, i32
  }
  func.func @transform_5(%arg0: i32) -> (i32, i32) {
    %c0_i32 = arith.constant 0 : i32
    %c0_i32_0 = arith.constant 0 : i32
    %c0_i32_1 = arith.constant 0 : i32
    return %c0_i32, %c0_i32_0 : i32, i32
  }
  func.func @transform_6(%arg0: i32) -> (i32, i32) {
    %c0_i32 = arith.constant 0 : i32
    %c0_i32_0 = arith.constant 0 : i32
    %c0_i32_1 = arith.constant 0 : i32
    return %c0_i32, %c0_i32_0 : i32, i32
  }
  func.func @transform_7(%arg0: i32) -> (i32, i32) {
    %c0_i32 = arith.constant 0 : i32
    %c0_i32_0 = arith.constant 0 : i32
    return %c0_i32, %arg0 : i32, i32
  }
}

</mosaic_0001>

<bundles_post_ra>
// kernel: tpu_custom_call.1
= control target key start
LH: loop header
LB: loop body
LE: loop exit
PB: predicated region body
PF: predicated region fallthrough
CT: control target
= control target key end

     0   :  { %12 = vsyncpa [#allocation4], 0  ;;  %s4374_s0 = inlined_call_operand.vmem [shape: f32[16,256], index: 0, kind: input, shape index: {}]   ;;  %s4375_s1 = inlined_call_operand.vmem [shape: f32[64,16], index: 1, kind: input, shape index: {}]   ;;  %s4376_s2 = inlined_call_operand.vmem [shape: f32[64,1], index: 2, kind: input, shape index: {}]   ;;  %s4377_s3 = inlined_call_operand.vmem [shape: f32[64,64], index: 3, kind: input, shape index: {}]   ;;  %s4378_s4 = inlined_call_operand.vmem [shape: f32[64,1], index: 4, kind: input, shape index: {}]   ;;  %s4379_s5 = inlined_call_operand.vmem [shape: f32[8,64], index: 5, kind: input, shape index: {}]   ;;  %s4380_s6 = inlined_call_operand.vmem [shape: f32[8,1], index: 6, kind: input, shape index: {}]   ;;  %s4381_s7 = inlined_call_operand.hbm [shape: f32[8,256], index: 7, kind: output, shape index: {}]  }
   0x1   :  { %14 = vsyncpa [#allocation4 + $0x1], 0  ;;  %s3506_s24 = smov 0   ;;  %s3508_s25 = smov 0  }
   0x2   :  { %s3510_s26 = smov 0   ;;  %s3512_s27 = smov 0  }
   0x3 LB: > { %s2721_s28 = sadd.s32 4294967295, %s3460_s27   ;;  %s2722_s29 = sadd.s32 4294967294, %s3460_s27   ;;  %s3460_s27 = sphi %s3512_s27, %s4387_s27   ;;  %s3456_s26 = sphi %s3510_s26, %s4386_s26   ;;  %s3452_s25 = sphi %s3508_s25, %s4385_s25   ;;  %s3448_s24 = sphi %s3506_s24, %s4384_s24  }
   0x4   : > { %s3529_s30 = sadd.s32 1, %s3460_s27   ;;  %s27_s8 = sadd.s32 1, %s3456_s26 }
   0x5   : > { %s24_s9 = ssub.s32 %s3460_s27, %s3529_s30  ;;  %p34_p0 = scmp.ne.s32.totalorder %s3456_s26, %s3452_s25 }
   0x6   : > { %p25_p1 = scmp.eq.s32.totalorder %s24_s9, 0  ;;  %p35_p2 = scmp.eq.s32.totalorder %s3460_s27, 0 }
   0x7   : > { %p190_p3 = scmp.eq.s32.totalorder %s2721_s28, 1  ;;  %p195_p4 = scmp.ne.s32.totalorder %s3452_s25, %s3448_s24 }
   0x8   : > { %s3542_s10 = scalar_select %p25_p1, %s3456_s26, %s27_s8  }
   0x9   : > { %p36_p5 = por %p35_p2, %p34_p0  ;;  %p3544_p6 = por %p190_p3, %p34_p0 }
   0xa   : > { %p196_p7 = scmp.eq.s32.totalorder %s2722_s29, 1  ;;  %p2724_p9 = scmp.ge.s32.totalorder %s3460_s27, 2 }
   0xc   : > { %p3548_p8 = por %p196_p7, %p195_p4  ;;  %230 = sbr.rel (%p2724_p9) target bundleno = 22 (0x16), region = 40 }
  0x11   : > { %233 = sbr.rel (!%p36_p5) target bundleno = 22 (0x16), region = 44  ;;  %s235_s13 = sand.u32 (%p36_p5), 1, %s3456_s26  }
  0x12   : > { %s2726_s14 = sshll.u32 (%p36_p5), %s3460_s27, 3  ;;  %s2725_s15 = sshll.u32 (%p36_p5), %s235_s13, 4 }
  0x13   : > { %s239_s18 = scalar_lea.vmem (%p36_p5), %s4374_s0, %s2726_s14  ;;  %s237_s19 = scalar_lea.vmem (%p36_p5), [#allocation2], %s2725_s15 }
  0x14   : > { %v270_v0 = vld [vmem:[%s239_s18] sm:$0xff] (%p36_p5)  ;;  %v272_v1 = vld [vmem:[%s239_s18 + $0x10] sm:$0xff] (%p36_p5) }
  0x15   : > { %271 = vst [vmem:[%s237_s19] sm:$0xff] (%p36_p5), %v270_v0  ;;  %273 = vst [vmem:[%s237_s19 + $0x8] sm:$0xff] (%p36_p5), %v272_v1 }
  0x16 PF: > { %p2727_p10 = scmp.ge.s32.totalorder %s3460_s27, 1  ;;  %p278_p11 = scmp.lt.s32.totalorder %s3460_s27, 3 }
  0x18   : > { %p279_p12 = pnand %p2727_p10, %p278_p11 }
  0x19   : > { %s3563_s20 = sand.u32 (!%p279_p12), 1, %s3452_s25   ;;  %s3465_s22 = smov (!%p279_p12), [#allocation3]  }
  0x1a   : > { %282 = sbr.rel (%p279_p12) target bundleno = 879 (0x36f), region = 82  ;;  %s2728_s13 = sshll.u32 (!%p279_p12), %s3563_s20, 4 }
  0x1b   : > { %s287_s21 = scalar_lea.vmem (!%p279_p12), [#allocation2], %s2728_s13  ;;  %s2729_s9 = sshll.u32 (!%p279_p12), %s3563_s20, 3 }
  0x1c   : > { %s2731_s13 = sshll.u32 (!%p279_p12), %s2721_s28, 7  ;;  %s315_s14 = scalar_lea.vmem (!%p279_p12), [#allocation3], %s2729_s9 }
  0x1d   : > { %s2657_s15 = sshll.u32 (!%p279_p12), %s315_s14, 4  ;;  %s4337_s18 = scalar_lea.hbm (!%p279_p12), %s4381_s7, %s2731_s13  ;;  %s2658_s15 = int_to_ptr.vmem [resolvable:$true] %s2657_s15 }
  0x1e   : > { %s2644_s19 = scalar_lea.sflag (!%p279_p12), [#allocation4], %s3563_s20  ;;  %s3404_s23 = sshll.u32 (!%p279_p12), %s3465_s22, 4  ;;  %s3405_s23 = int_to_ptr.vmem [resolvable:$false] %s3404_s23 }
  0x1f   : > { %v318_v2 = vld [vmem:[%s4375_s1] sm:$0xff]  ;;  %vm374_vm0 = vcmask 130048   ;;  %v319_v3 = vld [vmem:[%s4375_s1 + $0x8] sm:$0xff]  ;;  %v320_v4 = vld [vmem:[%s4375_s1 + $0x10] sm:$0xff]  ;;  %v3462_v10 = vmov 0   ;;  %vm1223_vm1 = vcmask 523264   ;;  %p3407_p2 = scmp.lt.s32.totalorder %s2658_s15, %s3405_s23 }
  0x20   : > { %v376_v5 = vsel %vm374_vm0, %v318_v2, 0  ;;  %v379_v6 = vsel %vm374_vm0, %v319_v3, 0  ;;  %v382_v7 = vsel %vm374_vm0, %v320_v4, 0  ;;  %v321_v8 = vld [vmem:[%s4375_s1 + $0x18] sm:$0xff]  ;;  %v322_v9 = vld [vmem:[%s4375_s1 + $0x20] sm:$0xff]  ;;  %3365 = vset.pattern.permute.xlu1 %v3462_v10  ;;  %3364 = vset.pattern.permute.xlu0 %v3462_v10  ;;  %v323_v15 = vld [vmem:[%s4375_s1 + $0x28] sm:$0xff] }
  0x21   : > { %v3584_v11 = vand.u32 4294901760, %v376_v5  ;;  %v3586_v12 = vand.u32 4294901760, %v379_v6  ;;  %v3588_v13 = vand.u32 4294901760, %v382_v7  ;;  %v385_v14 = vsel %vm374_vm0, %v321_v8, 0  ;;  %v317_v16 = vld [vmem:[%s287_s21 + $0x8] sm:$0xff]  ;;  %v316_v17 = vld [vmem:[%s287_s21] sm:$0xff] }
  0x22   : > { %v3594_v18 = vand.u32 4294901760, %v385_v14  ;;  %v388_v19 = vsel %vm374_vm0, %v322_v9, 0  ;;  %v391_v20 = vsel %vm374_vm0, %v323_v15, 0  ;;  %v3598_v21 = vand.u32 4294901760, %v317_v16  ;;  %v333_v25 = vld [vmem:[%s4376_s2 + $0x38] sm:$0xff]  ;;  %v331_v26 = vld [vmem:[%s4376_s2 + $0x28] sm:$0xff] }
  0x23   : > { %v3600_v22 = vand.u32 4294901760, %v316_v17  ;;  %v3603_v23 = vsub.f32 %v376_v5, %v3584_v11  ;;  %v3606_v24 = vsub.f32 %v379_v6, %v3586_v12  ;;  %2964 = vmatprep.mubr.f32.mxu1 %v3584_v11  ;;  %v3616_v27 = vsub.f32 %v382_v7, %v3588_v13  ;;  %371 = vperm.xlu0 %3364, %v333_v25   ;;  %v332_v35 = vld [vmem:[%s4376_s2 + $0x30] sm:$0xff]  ;;  %v330_v40 = vld [vmem:[%s4376_s2 + $0x20] sm:$0xff]  ;;  %v325_v50 = vld [vmem:[%s4375_s1 + $0x38] sm:$0xff]  ;;  %s3400_s21 = scalar_lea.vmem %s2658_s15, 128  ;;  %s3406_s28 = scalar_lea.vmem %s3405_s23, 256 }
  0x24   : > { %v3619_v28 = vsub.f32 %v385_v14, %v3594_v18  ;;  %v3621_v29 = vand.u32 4294901760, %v388_v19  ;;  %v3623_v30 = vand.u32 4294901760, %v391_v20  ;;  %361 = vperm.xlu1 %3365, %v331_v26   ;;  %2944 = vmatprep.subr.mxu0 %v3598_v21  ;;  %v576_v33 = vsub.f32 %v317_v16, %v3598_v21  ;;  %v324_v49 = vld [vmem:[%s4375_s1 + $0x30] sm:$0xff]  ;;  %v329_v55 = vld [vmem:[%s4376_s2 + $0x18] sm:$0xff]  ;;  %v327_v16 = vld [vmem:[%s4376_s2 + $0x8] sm:$0xff]  ;;  %p3401_p13 = scmp.ne.s32.totalorder %s2658_s15, %s3400_s21  ;;  %p3408_p3 = scmp.lt.s32.totalorder %s3406_s28, %s3400_s21 }
  0x25   : > { %v468_v31 = vand.u32 4294901760, %v3603_v23  ;;  %v478_v32 = vand.u32 4294901760, %v3606_v24  ;;  %v583_v34 = vsub.f32 %v316_v17, %v3600_v22  ;;  %2945 = vmatpush3.msra.mxu0 %v3598_v21  ;;  %v488_v36 = vand.u32 4294901760, %v3616_v27  ;;  %v328_v15 = vld [vmem:[%s4376_s2 + $0x10] sm:$0xff]  ;;  %v326_v17 = vld [vmem:[%s4376_s2] sm:$0xff]  ;;  %v1176_v25 = vld [vmem:[%s4378_s4 + $0x8] sm:$0xff] }
  0x26   : > { %v498_v37 = vand.u32 4294901760, %v3619_v28  ;;  %v3637_v38 = vsub.f32 %v388_v19, %v3621_v29  ;;  %v3640_v39 = vsub.f32 %v391_v20, %v3623_v30  ;;  %2946 = vmatprep.subr.mxu0 %v3600_v22  ;;  %v3652_v43 = vand.u32 4294901760, %v576_v33  ;;  %v1182_v19 = vld [vmem:[%s4378_s4 + $0x38] sm:$0xff]  ;;  %v1181_v20 = vld [vmem:[%s4378_s4 + $0x30] sm:$0xff]  ;;  %v1175_v26 = vld [vmem:[%s4378_s4] sm:$0xff]  ;;  %p3402_p0 = pnand %p3401_p13, %p3544_p6  ;;  %p3409_p4 = por %p3408_p3, %p3407_p2 }
  0x27   : > { %v469_v41 = vsub.f32 %v3603_v23, %v468_v31  ;;  %v479_v42 = vsub.f32 %v3606_v24, %v478_v32  ;;  %v3654_v44 = vand.u32 4294901760, %v583_v34  ;;  %2947 = vmatpush3.msra.mxu0 %v3600_v22  ;;  %v489_v45 = vsub.f32 %v3616_v27, %v488_v36  ;;  %366 = vperm.xlu0 %3364, %v332_v35  }
  0x28   : > { %v499_v46 = vsub.f32 %v3619_v28, %v498_v37  ;;  %v508_v47 = vand.u32 4294901760, %v3637_v38  ;;  %v518_v48 = vand.u32 4294901760, %v3640_v39  ;;  %v578_v53 = vsub.f32 %v576_v33, %v3652_v43  ;;  %2976 = vmatprep.subr.mxu0 %v576_v33  ;;  %356 = vperm.xlu1 %3365, %v330_v40   ;;  %p3403_p1 = pneg %p3402_p0 }
  0x29   : > { %v470_v51 = vand.u32 4294901760, %v469_v41  ;;  %v480_v52 = vand.u32 4294901760, %v479_v42  ;;  %v585_v54 = vsub.f32 %v583_v34, %v3654_v44  ;;  %v490_v56 = vand.u32 4294901760, %v489_v45 }
  0x2a   : > { %v509_v57 = vsub.f32 %v3637_v38, %v508_v47  ;;  %v579_v58 = vand.u32 4294901760, %v578_v53  ;;  %v394_v60 = vsel %vm374_vm0, %v324_v49, 0  ;;  %v397_v61 = vsel %vm374_vm0, %v325_v50, 0  ;;  %p3410_p5 = pnand %p3409_p4, %p3403_p1 }
  0x2b   : > { %2948 = vmatprep.mubr.f32.mxu0 %v470_v51  ;;  %v586_v59 = vand.u32 4294901760, %v585_v54  ;;  %v500_v62 = vand.u32 4294901760, %v499_v46  ;;  %v519_v63 = vsub.f32 %v3640_v39, %v518_v48  ;;  %v3684_v0 = vand.u32 4294901760, %v394_v60  ;;  %351 = vperm.xlu0 %3364, %v329_v55  }
  0x2c   : > { %2949 = vmatmul.mubr.f32.vlgmr.msra.gmra.mxu0 %v480_v52  ;;  %v3686_v1 = vand.u32 4294901760, %v397_v61  ;;  %2960 = vmatprep.subr.mxu1 %v579_v58  ;;  %v510_v2 = vand.u32 4294901760, %v509_v57  ;;  %vm3464_vm2 = vmmov 0  }
  0x2d   : > { %2951 = vmatprep.mubr.f32.mxu0 %v490_v56  ;;  %2961 = vmatpush3.msra.mxu1 %v579_v58  ;;  %v3689_v3 = vsub.f32 %v394_v60, %v3684_v0  ;;  %v520_v5 = vand.u32 4294901760, %v519_v63 }
  0x2e   : > { %2977 = vmatpush3.msra.mxu0 %v576_v33  ;;  %v3692_v4 = vsub.f32 %v397_v61, %v3686_v1  ;;  %2962 = vmatprep.subr.mxu1 %v586_v59 }
  0x2f   : > { %2978 = vmatprep.subr.mxu0 %v583_v34  ;;  %2963 = vmatpush3.msra.mxu1 %v586_v59  ;;  %v528_v6 = vand.u32 4294901760, %v3689_v3 }
  0x30   : > { %2952 = vmatmul.mubr.f32.gmra.mxu0 %v500_v62  ;;  %v538_v7 = vand.u32 4294901760, %v3692_v4  ;;  %2965 = vmatmul.mubr.f32.vlgmr.msra.gmra.mxu1 %v3586_v12 }
  0x31   : > { %2992 = vmatprep.subr.mxu1 %v3598_v21  ;;  %2954 = vmatprep.mubr.f32.mxu0 %v510_v2  ;;  %v529_v8 = vsub.f32 %v3689_v3, %v528_v6 }
  0x32   : > { %2993 = vmatpush3.msra.mxu1 %v3598_v21  ;;  %v539_v9 = vsub.f32 %v3692_v4, %v538_v7  ;;  %2967 = vmatprep.mubr.f32.mxu1 %v3588_v13 }
  0x33   : > { %2979 = vmatpush3.msra.mxu0 %v583_v34  ;;  %v530_v10 = vand.u32 4294901760, %v529_v8  ;;  %2994 = vmatprep.subr.mxu1 %v3600_v22 }
  0x34   : > { %2955 = vmatmul.mubr.f32.gmra.mxu0 %v520_v5  ;;  %v540_v14 = vand.u32 4294901760, %v539_v9  ;;  %2968 = vmatmul.mubr.f32.gmra.mxu1 %v3594_v18 }
  0x35   : > { %3008 = vmatprep.subr.mxu0 %v3652_v43  ;;  %2957 = vmatprep.mubr.f32.mxu0 %v530_v10 }
  0x36   : > { %2970 = vmatprep.mubr.f32.mxu1 %v3621_v29  ;;  %2995 = vmatpush3.msra.mxu1 %v3600_v22 }
  0x37   : > { %346 = vperm.xlu1 %3365, %v328_v15   ;;  %3024 = vmatprep.subr.mxu1 %v3598_v21 }
  0x38   : > { %2958 = vmatmul.mubr.f32.gmra.mxu0 %v540_v14  ;;  %2971 = vmatmul.mubr.f32.gmra.mxu1 %v3623_v30 }
  0x39   : > { %2980 = vmatprep.mubr.f32.mxu0 %v3603_v23  ;;  %2973 = vmatprep.mubr.f32.mxu1 %v3684_v0  ;;  %v1180_v23 = vld [vmem:[%s4378_s4 + $0x28] sm:$0xff] }
  0x3a   : > { %341 = vperm.xlu0 %3364, %v327_v16  }
  0x3b   : > { %336 = vperm.xlu1 %3365, %v326_v17  }
  0x3c   : > { %2981 = vmatmul.mubr.f32.vlgmr.msra.gmra.mxu0 %v3606_v24  ;;  %2974 = vmatmul.mubr.f32.gmra.mxu1 %v3686_v1  ;;  %v1179_v24 = vld [vmem:[%s4378_s4 + $0x20] sm:$0xff] }
  0x3d   : > { %2983 = vmatprep.mubr.f32.mxu0 %v3616_v27  ;;  %2996 = vmatprep.mubr.f32.mxu1 %v468_v31  ;;  %v2095_v27 = vld [vmem:[%s4380_s6] sm:$0xff] }
  0x3e   : > { %3009 = vmatpush3.msra.mxu0 %v3652_v43  ;;  %1220 = vperm.xlu0 %3364, %v1182_v19  }
  0x3f   : > { %3010 = vmatprep.subr.mxu0 %v3654_v44  ;;  %1215 = vperm.xlu1 %3365, %v1181_v20  }
  0x40   : > { %2984 = vmatmul.mubr.f32.gmra.mxu0 %v3619_v28  ;;  %2997 = vmatmul.mubr.f32.vlgmr.msra.gmra.mxu1 %v478_v32 }
  0x41   : > { %2986 = vmatprep.mubr.f32.mxu0 %v3637_v38  ;;  %3025 = vmatpush3.msra.mxu1 %v3598_v21  ;;  %v1178_v21 = vld [vmem:[%s4378_s4 + $0x18] sm:$0xff] }
  0x42   : > { %2999 = vmatprep.mubr.f32.mxu1 %v488_v36  ;;  %3011 = vmatpush3.msra.mxu0 %v3654_v44 }
  0x43   : > { %3026 = vmatprep.subr.mxu1 %v3600_v22  ;;  %1210 = vperm.xlu0 %3364, %v1180_v23  }
  0x44   : > { %2987 = vmatmul.mubr.f32.gmra.mxu0 %v3640_v39  ;;  %3027 = vmatpush3.msra.mxu1 %v3600_v22  ;;  %v1177_v22 = vld [vmem:[%s4378_s4 + $0x10] sm:$0xff] }
  0x45   : > { %3000 = vmatmul.mubr.f32.gmra.mxu1 %v498_v37  ;;  %2989 = vmatprep.mubr.f32.mxu0 %v3689_v3 }
  0x46   : > { %3002 = vmatprep.mubr.f32.mxu1 %v508_v47  ;;  %1205 = vperm.xlu1 %3365, %v1179_v24  }
  0x47   : > { %1200 = vperm.xlu0 %3364, %v1178_v21  }
  0x48   : > { %2990 = vmatmul.mubr.f32.gmra.mxu0 %v3692_v4 }
  0x49   : > { %3003 = vmatmul.mubr.f32.gmra.mxu1 %v518_v48  ;;  %3012 = vmatprep.mubr.f32.mxu0 %v3584_v11 }
  0x4a   : > { %3005 = vmatprep.mubr.f32.mxu1 %v528_v6  ;;  %1195 = vperm.xlu1 %3365, %v1177_v22  }
  0x4b   : > { %1190 = vperm.xlu0 %3364, %v1176_v25  }
  0x4c   : > { %3013 = vmatmul.mubr.f32.vlgmr.msra.gmra.mxu0 %v3586_v12 }
  0x4d   : > { %3006 = vmatmul.mubr.f32.gmra.mxu1 %v538_v7  ;;  %3015 = vmatprep.mubr.f32.mxu0 %v3588_v13 }
  0x4e   : > { %3028 = vmatprep.mubr.f32.mxu1 %v3584_v11  ;;  %1185 = vperm.xlu1 %3365, %v1175_v26   ;;  %v1167_v11 = vld [vmem:[%s4377_s3] sm:$0xff] }
  0x4f   : > { %2098 = vperm.xlu0 %3364, %v2095_v27  }
  0x50   : > { %3016 = vmatmul.mubr.f32.gmra.mxu0 %v3594_v18 }
  0x51   : > { %3029 = vmatmul.mubr.f32.vlgmr.msra.gmra.mxu1 %v3586_v12  ;;  %3018 = vmatprep.mubr.f32.mxu0 %v3621_v29  ;;  %v1225_v12 = vsel %vm1223_vm1, %v1167_v11, 0 }
  0x52   : > { %3031 = vmatprep.mubr.f32.mxu1 %v3588_v13  ;;  %v3797_v13 = vand.u32 4294901760, %v1225_v12 }
  0x54   : > { %3019 = vmatmul.mubr.f32.gmra.mxu0 %v3623_v30 }
  0x55   : > { %3032 = vmatmul.mubr.f32.gmra.mxu1 %v3594_v18  ;;  %3021 = vmatprep.mubr.f32.mxu0 %v3684_v0  ;;  %v3800_v18 = vsub.f32 %v1225_v12, %v3797_v13 }
  0x56   : > { %3034 = vmatprep.mubr.f32.mxu1 %v3621_v29 }
  0x57   : > { %v1323_v28 = vand.u32 4294901760, %v3800_v18 }
  0x58   : > { %3022 = vmatmul.mubr.f32.gmra.mxu0 %v3686_v1 }
  0x59   : > { %3035 = vmatmul.mubr.f32.gmra.mxu1 %v3623_v30  ;;  %v1324_v29 = vsub.f32 %v3800_v18, %v1323_v28 }
  0x5a   : > { %3037 = vmatprep.mubr.f32.mxu1 %v3684_v0 }
  0x5b   : > { %v1325_v30 = vand.u32 4294901760, %v1324_v29 }
  0x5d   : > { %3038 = vmatmul.mubr.f32.gmra.mxu1 %v3686_v1  ;;  %3056 = vmatprep.mubr.f32.mxu0 %v1325_v30 }
  0x5e   : > { %3084 = vmatprep.mubr.f32.mxu1 %v3797_v13 }
  0x9e   : > { %v372_v47 = vpop.permute.xlu0 %371 }
  0x9f   : > { %v362_v52 = vpop.permute.xlu1 %361 }
  0xa2   : > { %v367_v55 = vpop.permute.xlu0 %366 }
  0xa3   : > { %v357_v60 = vpop.permute.xlu1 %356 }
  0xa6   : > { %v352_v63 = vpop.permute.xlu0 %351 }
  0xb2   : > { %v347_v5 = vpop.permute.xlu1 %346 }
  0xb5   : > { %v342_v9 = vpop.permute.xlu0 %341 }
  0xb6   : > { %v337_v26 = vpop.permute.xlu1 %336 }
  0xec   : > { %v2950_v31 = vpop.f32.mrf.mxu0 }
  0xed   : > { %v483_v24 = vadd.f32 %v2950_v31, %v342_v9 }
  0xee   : > { %v3807_v32 = vpop.f32.mrf.mxu0 }
  0xf0   : > { %v2953_v33 = vpop.f32.mrf.mxu0  ;;  %v3809_v34 = vpop.f32.mrf.mxu1 }
  0xf1   : > { %v503_v3 = vadd.f32 %v2953_v33, %v352_v63 }
  0xf2   : > { %v492_v35 = vpop.f32.mrf.mxu0  ;;  %v3811_v36 = vpop.f32.mrf.mxu1 }
  0xf3   : > { %v493_v14 = vadd.f32 %v492_v35, %v347_v5 }
  0xf4   : > { %v2956_v37 = vpop.f32.mrf.mxu0  ;;  %v2969_v38 = vpop.f32.mrf.mxu1 }
  0xf5   : > { %v523_v6 = vadd.f32 %v2956_v37, %v362_v52  ;;  %v642_v15 = vadd.f32 %v2969_v38, %v503_v3 }
  0xf6   : > { %v512_v39 = vpop.f32.mrf.mxu0  ;;  %v635_v40 = vpop.f32.mrf.mxu1 }
  0xf7   : > { %v513_v17 = vadd.f32 %v512_v39, %v357_v60  ;;  %v636_v21 = vadd.f32 %v635_v40, %v493_v14  ;;  %v473_v39 = vadd.f32 %v3807_v32, %v337_v26  ;;  %v1171_v26 = vld [vmem:[%s4377_s3 + $0x20] sm:$0xff] }
  0xf8   : > { %v2959_v41 = vpop.f32.mrf.mxu0  ;;  %v2972_v42 = vpop.f32.mrf.mxu1 }
  0xf9   : > { %v543_v19 = vadd.f32 %v2959_v41, %v372_v47  ;;  %v654_v20 = vadd.f32 %v2972_v42, %v523_v6  ;;  %v630_v41 = vadd.f32 %v3809_v34, %v483_v24  ;;  %v1170_v24 = vld [vmem:[%s4377_s3 + $0x18] sm:$0xff] }
  0xfa   : > { %v532_v43 = vpop.f32.mrf.mxu0  ;;  %v647_v44 = vpop.f32.mrf.mxu1 }
  0xfb   : > { %v648_v27 = vadd.f32 %v647_v44, %v513_v17  ;;  %v533_v37 = vadd.f32 %v532_v43, %v367_v55 }
  0xfc   : > { %v3813_v45 = vpop.f32.mrf.mxu0  ;;  %v2975_v46 = vpop.f32.mrf.mxu1 }
  0xfd   : > { %v666_v52 = vadd.f32 %v2975_v46, %v543_v19  ;;  %v749_v43 = vadd.f32 %v3813_v45, %v630_v41 }
  0xfe   : > { %v3815_v48 = vpop.f32.mrf.mxu0  ;;  %v659_v49 = vpop.f32.mrf.mxu1 }
  0xff   : > { %v660_v47 = vadd.f32 %v659_v49, %v533_v37 }
 0x100   : > { %v2985_v50 = vpop.f32.mrf.mxu0  ;;  %v3817_v51 = vpop.f32.mrf.mxu1 }
 0x101   : > { %v763_v22 = vadd.f32 %v2985_v50, %v642_v15 }
 0x102   : > { %v755_v53 = vpop.f32.mrf.mxu0  ;;  %v3819_v54 = vpop.f32.mrf.mxu1 }
 0x103   : > { %v756_v29 = vadd.f32 %v755_v53, %v636_v21  ;;  %v624_v53 = vadd.f32 %v3811_v36, %v473_v39 }
 0x104   : > { %v2988_v56 = vpop.f32.mrf.mxu0 }
 0x105   : > { %v3001_v57 = vpop.f32.mrf.mxu1  ;;  %v777_v11 = vadd.f32 %v2988_v56, %v654_v20  ;;  %v742_v34 = vadd.f32 %v3815_v48, %v624_v53 }
 0x106   : > { %v769_v58 = vpop.f32.mrf.mxu0  ;;  %v890_v30 = vadd.f32 %v3001_v57, %v763_v22 }
 0x107   : > { %v881_v59 = vpop.f32.mrf.mxu1  ;;  %v770_v35 = vadd.f32 %v769_v58, %v648_v27  ;;  %v866_v45 = vadd.f32 %v3819_v54, %v742_v34  ;;  %v1168_v54 = vld [vmem:[%s4377_s3 + $0x8] sm:$0xff]  ;;  %v1173_v34 = vld [vmem:[%s4377_s3 + $0x30] sm:$0xff] }
 0x108   : > { %v2991_v61 = vpop.f32.mrf.mxu0  ;;  %v882_v31 = vadd.f32 %v881_v59, %v756_v29  ;;  %v874_v59 = vadd.f32 %v3817_v51, %v749_v43 }
 0x109   : > { %v3004_v62 = vpop.f32.mrf.mxu1  ;;  %v791_v50 = vadd.f32 %v2991_v61, %v666_v52 }
 0x10a   : > { %v783_v0 = vpop.f32.mrf.mxu0  ;;  %v906_v38 = vadd.f32 %v3004_v62, %v777_v11 }
 0x10b   : > { %v897_v1 = vpop.f32.mrf.mxu1  ;;  %v784_v58 = vadd.f32 %v783_v0, %v660_v47 }
 0x10c   : > { %v3014_v2 = vpop.f32.mrf.mxu0  ;;  %v898_v44 = vadd.f32 %v897_v1, %v770_v35 }
 0x10d   : > { %v3007_v4 = vpop.f32.mrf.mxu1  ;;  %v1005_v9 = vadd.f32 %v3014_v2, %v874_v59  ;;  %v1228_v2 = vsel %vm1223_vm1, %v1168_v54, 0 }
 0x10e   : > { %v998_v7 = vpop.f32.mrf.mxu0  ;;  %v922_v62 = vadd.f32 %v3007_v4, %v791_v50 }
 0x10f   : > { %v913_v8 = vpop.f32.mrf.mxu1  ;;  %v999_v14 = vadd.f32 %v998_v7, %v866_v45  ;;  %v1169_v7 = vld [vmem:[%s4377_s3 + $0x10] sm:$0xff]  ;;  %v1174_v45 = vld [vmem:[%s4377_s3 + $0x38] sm:$0xff] }
 0x110   : > { %v3017_v10 = vpop.f32.mrf.mxu0  ;;  %v914_v5 = vadd.f32 %v913_v8, %v784_v58 }
 0x111   : > { %v3030_v16 = vpop.f32.mrf.mxu1  ;;  %v1017_v40 = vadd.f32 %v3017_v10, %v890_v30  ;;  %v1234_v30 = vsel %vm1223_vm1, %v1170_v24, 0 }
 0x112   : > { %v1010_v23 = vpop.f32.mrf.mxu0  ;;  %v1120_v15 = vadd.f32 %v3030_v16, %v1005_v9 }
 0x113   : > { %v1113_v25 = vpop.f32.mrf.mxu1  ;;  %v1011_v46 = vadd.f32 %v1010_v23, %v882_v31  ;;  %v3837_v23 = vand.u32 4294901760, %v1228_v2 }
 0x114   : > { %v3020_v12 = vpop.f32.mrf.mxu0  ;;  %v1114_v17 = vadd.f32 %v1113_v25, %v999_v14  ;;  %v1231_v25 = vsel %vm1223_vm1, %v1169_v7, 0 }
 0x115   : > { %v3033_v33 = vpop.f32.mrf.mxu1  ;;  %v1029_v56 = vadd.f32 %v3020_v12, %v906_v38  ;;  %v3860_v52 = vsub.f32 %v1228_v2, %v3837_v23  ;;  %v3862_v35 = vand.u32 4294901760, %v1231_v25  ;;  %v1237_v38 = vsel %vm1223_vm1, %v1171_v26, 0 }
 0x116   : > { %v1022_v63 = vpop.f32.mrf.mxu0  ;;  %v1132_v55 = vadd.f32 %v3033_v33, %v1017_v40  ;;  %v1172_v33 = vld [vmem:[%s4377_s3 + $0x28] sm:$0xff]  ;;  %v1246_v2 = vsel %vm1223_vm1, %v1174_v45, 0 }
 0x117   : > { %v1125_v42 = vpop.f32.mrf.mxu1  ;;  %v1023_v32 = vadd.f32 %v1022_v63, %v898_v44  ;;  %v1240_v47 = vsel %vm1223_vm1, %v1172_v33, 0  ;;  %v3979_v33 = vand.u32 4294901760, %v1246_v2 }
 0x118   : > { %v3023_v60 = vpop.f32.mrf.mxu0  ;;  %v1126_v49 = vadd.f32 %v1125_v42, %v1011_v46  ;;  %v3877_v42 = vand.u32 4294901760, %v1234_v30  ;;  %v1333_v46 = vand.u32 4294901760, %v3860_v52 }
 0x119   : > { %v3036_v57 = vpop.f32.mrf.mxu1  ;;  %v1041_v6 = vadd.f32 %v3023_v60, %v922_v62 }
 0x11a   : > { %v1144_v3 = vadd.f32 %v3036_v57, %v1029_v56  ;;  %v1034_v61 = vpop.f32.mrf.mxu0  ;;  %v3900_v57 = vand.u32 4294901760, %v1237_v38  ;;  %v1334_v9 = vsub.f32 %v3860_v52, %v1333_v46 }
 0x11b   : > { %v1137_v1 = vpop.f32.mrf.mxu1  ;;  %v1035_v0 = vadd.f32 %v1034_v61, %v914_v5  ;;  %v3923_v61 = vand.u32 4294901760, %v1240_v47 }
 0x11c   : > { %3366 = vtanh.f32 %v1144_v3  ;;  %v1138_v36 = vadd.f32 %v1137_v1, %v1023_v32  ;;  %v1335_v24 = vand.u32 4294901760, %v1334_v9 }
 0x11d   : > { %3368 = vtanh.f32 %v1132_v55  ;;  %v3039_v10 = vpop.f32.mrf.mxu1  ;;  %v3898_v55 = vsub.f32 %v1231_v25, %v3862_v35 }
 0x11e   : > { %3370 = vtanh.f32 %v1138_v36  ;;  %v1156_v4 = vadd.f32 %v3039_v10, %v1041_v6 }
 0x11f   : > { %3372 = vtanh.f32 %v1126_v49  ;;  %v1149_v48 = vpop.f32.mrf.mxu1  ;;  %v3921_v49 = vsub.f32 %v1234_v30, %v3877_v42  ;;  %v1343_v10 = vand.u32 4294901760, %v3898_v55 }
 0x120   : > { %3374 = vtanh.f32 %v1156_v4  ;;  %v1150_v51 = vadd.f32 %v1149_v48, %v1035_v0  ;;  %v1243_v4 = vsel %vm1223_vm1, %v1173_v34, 0 }
 0x122   : > { %3376 = vtanh.f32 %v1150_v51  ;;  %v3952_v51 = vsub.f32 %v1237_v38, %v3900_v57 }
 0x123   : > { %3378 = vtanh.f32 %v1120_v15 }
 0x124   : > { %3380 = vtanh.f32 %v1114_v17  ;;  %v1353_v17 = vand.u32 4294901760, %v3921_v49  ;;  %v1363_v30 = vand.u32 4294901760, %v3952_v51 }
 0x129   : > { %v3367_v8 = vpop.eup %3366 }
 0x12a   : > { %v3369_v16 = vpop.eup %3368  ;;  %v3835_v19 = vand.u32 4294901760, %v3367_v8 }
 0x12b   : > { %v3371_v20 = vpop.eup %3370  ;;  %v3848_v11 = vand.u32 4294901760, %v3369_v16 }
 0x12c   : > { %v3373_v21 = vpop.eup %3372  ;;  %v3842_v22 = vand.u32 4294901760, %v3371_v20  ;;  %v3853_v29 = vsub.f32 %v3367_v8, %v3835_v19 }
 0x12d   : > { %v3375_v27 = vpop.eup %3374  ;;  %v3865_v39 = vand.u32 4294901760, %v3373_v21  ;;  %v3891_v53 = vsub.f32 %v3369_v16, %v3848_v11  ;;  %v3964_v16 = vsub.f32 %v1240_v47, %v3923_v61 }
 0x12e   : > { %v3850_v12 = vand.u32 4294901760, %v3375_v27  ;;  %v3874_v40 = vsub.f32 %v3371_v20, %v3842_v22  ;;  %v3888_v60 = vand.u32 4294901760, %v3853_v29  ;;  %v3966_v20 = vand.u32 4294901760, %v1243_v4 }
 0x12f   : > { %v3377_v37 = vpop.eup %3376  ;;  %v3912_v3 = vsub.f32 %v3373_v21, %v3865_v39  ;;  %v3931_v36 = vand.u32 4294901760, %v3891_v53  ;;  %v1344_v21 = vsub.f32 %v3898_v55, %v1343_v10  ;;  %v1373_v47 = vand.u32 4294901760, %v3964_v16 }
 0x130   : > { %v3379_v63 = vpop.eup %3378  ;;  %v3867_v41 = vand.u32 4294901760, %v3377_v37  ;;  %3040 = vmatprep.subr.mxu0 %v3850_v12  ;;  %v3871_v31 = vsub.f32 %v3375_v27, %v3850_v12  ;;  %v3909_v32 = vand.u32 4294901760, %v3874_v40  ;;  %v1435_v6 = vsub.f32 %v3853_v29, %v3888_v60 }
 0x131   : > { %3041 = vmatpush3.msra.mxu0 %v3850_v12  ;;  %v3381_v50 = vpop.eup %3380  ;;  %v3893_v43 = vand.u32 4294901760, %v3379_v63  ;;  %v3949_v48 = vand.u32 4294901760, %v3912_v3  ;;  %v1449_v7 = vsub.f32 %v3891_v53, %v3931_v36 }
 0x132   : > { %3042 = vmatprep.subr.mxu0 %v3867_v41  ;;  %v3882_v44 = vand.u32 4294901760, %v3871_v31  ;;  %v3885_v56 = vsub.f32 %v3377_v37, %v3867_v41  ;;  %v3917_v59 = vand.u32 4294901760, %v3381_v50  ;;  %v1442_v15 = vsub.f32 %v3874_v40, %v3909_v32 }
 0x133   : > { %3043 = vmatpush3.msra.mxu0 %v3867_v41  ;;  %v3942_v0 = vsub.f32 %v3379_v63, %v3893_v43  ;;  %v1436_v8 = vand.u32 4294901760, %v1435_v6  ;;  %v1456_v27 = vsub.f32 %v3912_v3, %v3949_v48  ;;  %v1354_v37 = vsub.f32 %v3921_v49, %v1353_v17 }
 0x134   : > { %3044 = vmatprep.subr.mxu0 %v3835_v19  ;;  %v1421_v58 = vsub.f32 %v3871_v31, %v3882_v44  ;;  %v3906_v62 = vand.u32 4294901760, %v3885_v56  ;;  %v3957_v54 = vsub.f32 %v3381_v50, %v3917_v59  ;;  %v1443_v26 = vand.u32 4294901760, %v1442_v15 }
 0x135   : > { %3045 = vmatpush3.msra.mxu0 %v3835_v19  ;;  %v3973_v25 = vand.u32 4294901760, %v3942_v0  ;;  %v1450_v63 = vand.u32 4294901760, %v1449_v7  ;;  %v3991_v50 = vsub.f32 %v1243_v4, %v3966_v20  ;;  %v4000_v6 = vsub.f32 %v1246_v2, %v3979_v33 }
 0x136   : > { %3046 = vmatprep.subr.mxu0 %v3842_v22  ;;  %v1422_v1 = vand.u32 4294901760, %v1421_v58  ;;  %v1428_v5 = vsub.f32 %v3885_v56, %v3906_v62  ;;  %v3986_v38 = vand.u32 4294901760, %v3957_v54  ;;  %v1345_v58 = vand.u32 4294901760, %v1344_v21 }
 0x137   : > { %3047 = vmatpush3.msra.mxu0 %v3842_v22  ;;  %v1463_v34 = vsub.f32 %v3942_v0, %v3973_v25  ;;  %v1355_v45 = vand.u32 4294901760, %v1354_v37  ;;  %v1374_v4 = vsub.f32 %v3964_v16, %v1373_v47 }
 0x138   : > { %3048 = vmatprep.subr.mxu0 %v3848_v11  ;;  %3068 = vmatprep.subr.mxu1 %v1422_v1  ;;  %v1429_v14 = vand.u32 4294901760, %v1428_v5  ;;  %v1364_v5 = vsub.f32 %v3952_v51, %v1363_v30  ;;  %v1470_v9 = vsub.f32 %v3957_v54, %v3986_v38 }
 0x139   : > { %3049 = vmatpush3.msra.mxu0 %v3848_v11  ;;  %3069 = vmatpush3.msra.mxu1 %v1422_v1  ;;  %v1457_v1 = vand.u32 4294901760, %v1456_v27  ;;  %v1464_v15 = vand.u32 4294901760, %v1463_v34  ;;  %v1375_v7 = vand.u32 4294901760, %v1374_v4 }
 0x13a   : > { %3050 = vmatprep.subr.mxu0 %v3865_v39  ;;  %3070 = vmatprep.subr.mxu1 %v1429_v14  ;;  %v1365_v2 = vand.u32 4294901760, %v1364_v5 }
 0x13b   : > { %3051 = vmatpush3.msra.mxu0 %v3865_v39  ;;  %3071 = vmatpush3.msra.mxu1 %v1429_v14  ;;  %v1383_v14 = vand.u32 4294901760, %v3991_v50 }
 0x13c   : > { %3052 = vmatprep.subr.mxu0 %v3893_v43  ;;  %3072 = vmatprep.subr.mxu1 %v1436_v8 }
 0x13d   : > { %3053 = vmatpush3.msra.mxu0 %v3893_v43  ;;  %3073 = vmatpush3.msra.mxu1 %v1436_v8  ;;  %v1393_v8 = vand.u32 4294901760, %v4000_v6 }
 0x13e   : > { %3054 = vmatprep.subr.mxu0 %v3917_v59  ;;  %3074 = vmatprep.subr.mxu1 %v1443_v26 }
 0x13f   : > { %3055 = vmatpush3.msra.mxu0 %v3917_v59  ;;  %3075 = vmatpush3.msra.mxu1 %v1443_v26 }
 0x140   : > { %3057 = vmatmul.mubr.f32.vlgmr.msra.gmra.mxu0 %v1335_v24  ;;  %3076 = vmatprep.subr.mxu1 %v1450_v63  ;;  %v1384_v24 = vsub.f32 %v3991_v50, %v1383_v14 }
 0x141   : > { %3096 = vmatprep.subr.mxu0 %v3871_v31  ;;  %3077 = vmatpush3.msra.mxu1 %v1450_v63 }
 0x142   : > { %3097 = vmatpush3.msra.mxu0 %v3871_v31  ;;  %3078 = vmatprep.subr.mxu1 %v1457_v1  ;;  %v1471_v31 = vand.u32 4294901760, %v1470_v9  ;;  %v1385_v21 = vand.u32 4294901760, %v1384_v24 }
 0x143   : > { %3098 = vmatprep.subr.mxu0 %v3885_v56  ;;  %3059 = vmatprep.mubr.f32.mxu0 %v1345_v58 }
 0x144   : > { %3079 = vmatpush3.msra.mxu1 %v1457_v1  ;;  %3099 = vmatpush3.msra.mxu0 %v3885_v56  ;;  %v1394_v56 = vsub.f32 %v4000_v6, %v1393_v8 }
 0x145   : > { %3060 = vmatmul.mubr.f32.gmra.mxu0 %v1355_v45  ;;  %3080 = vmatprep.subr.mxu1 %v1464_v15 }
 0x146   : > { %3100 = vmatprep.subr.mxu0 %v3853_v29  ;;  %3081 = vmatpush3.msra.mxu1 %v1464_v15 }
 0x147   : > { %3101 = vmatpush3.msra.mxu0 %v3853_v29  ;;  %3082 = vmatprep.subr.mxu1 %v1471_v31  ;;  %v1395_v29 = vand.u32 4294901760, %v1394_v56 }
 0x148   : > { %3102 = vmatprep.subr.mxu0 %v3874_v40  ;;  %3062 = vmatprep.mubr.f32.mxu0 %v1365_v2 }
 0x149   : > { %3083 = vmatpush3.msra.mxu1 %v1471_v31  ;;  %3103 = vmatpush3.msra.mxu0 %v3874_v40 }
 0x14a   : > { %3063 = vmatmul.mubr.f32.gmra.mxu0 %v1375_v7  ;;  %3085 = vmatmul.mubr.f32.vlgmr.msra.gmra.mxu1 %v3837_v23 }
 0x14b   : > { %3104 = vmatprep.subr.mxu0 %v3891_v53  ;;  %3124 = vmatprep.subr.mxu1 %v3850_v12 }
 0x14c   : > { %3105 = vmatpush3.msra.mxu0 %v3891_v53  ;;  %3125 = vmatpush3.msra.mxu1 %v3850_v12 }
 0x14d   : > { %3106 = vmatprep.subr.mxu0 %v3912_v3  ;;  %3126 = vmatprep.subr.mxu1 %v3867_v41 }
 0x14e   : > { %3065 = vmatprep.mubr.f32.mxu0 %v1385_v21  ;;  %3087 = vmatprep.mubr.f32.mxu1 %v3862_v35 }
 0x14f   : > { %3107 = vmatpush3.msra.mxu0 %v3912_v3  ;;  %3127 = vmatpush3.msra.mxu1 %v3867_v41 }
 0x150   : > { %3066 = vmatmul.mubr.f32.gmra.mxu0 %v1395_v29  ;;  %3088 = vmatmul.mubr.f32.gmra.mxu1 %v3877_v42 }
 0x151   : > { %3108 = vmatprep.subr.mxu0 %v3942_v0  ;;  %3128 = vmatprep.subr.mxu1 %v3835_v19 }
 0x152   : > { %3109 = vmatpush3.msra.mxu0 %v3942_v0  ;;  %3129 = vmatpush3.msra.mxu1 %v3835_v19 }
 0x153   : > { %3110 = vmatprep.subr.mxu0 %v3957_v54  ;;  %3130 = vmatprep.subr.mxu1 %v3842_v22 }
 0x154   : > { %3090 = vmatprep.mubr.f32.mxu1 %v3900_v57  ;;  %3111 = vmatpush3.msra.mxu0 %v3957_v54 }
 0x155   : > { %3112 = vmatprep.mubr.f32.mxu0 %v3800_v18  ;;  %3131 = vmatpush3.msra.mxu1 %v3842_v22 }
 0x156   : > { %3091 = vmatmul.mubr.f32.gmra.mxu1 %v3923_v61  ;;  %3113 = vmatmul.mubr.f32.vlgmr.msra.gmra.mxu0 %v3860_v52 }
 0x157   : > { %3132 = vmatprep.subr.mxu1 %v3848_v11  ;;  %3152 = vmatprep.subr.mxu0 %v3882_v44 }
 0x158   : > { %3133 = vmatpush3.msra.mxu1 %v3848_v11  ;;  %3153 = vmatpush3.msra.mxu0 %v3882_v44 }
 0x159   : > { %3134 = vmatprep.subr.mxu1 %v3865_v39  ;;  %3154 = vmatprep.subr.mxu0 %v3906_v62 }
 0x15a   : > { %3093 = vmatprep.mubr.f32.mxu1 %v3966_v20  ;;  %3115 = vmatprep.mubr.f32.mxu0 %v3898_v55 }
 0x15b   : > { %3135 = vmatpush3.msra.mxu1 %v3865_v39  ;;  %3155 = vmatpush3.msra.mxu0 %v3906_v62 }
 0x15c   : > { %3094 = vmatmul.mubr.f32.gmra.mxu1 %v3979_v33  ;;  %3116 = vmatmul.mubr.f32.gmra.mxu0 %v3921_v49  ;;  %v1221_v49 = vpop.permute.xlu0 %1220 }
 0x15d   : > { %3136 = vmatprep.subr.mxu1 %v3893_v43  ;;  %3156 = vmatprep.subr.mxu0 %v3888_v60 }
 0x15e   : > { %3137 = vmatpush3.msra.mxu1 %v3893_v43  ;;  %3157 = vmatpush3.msra.mxu0 %v3888_v60 }
 0x15f   : > { %3138 = vmatprep.subr.mxu1 %v3917_v59  ;;  %3158 = vmatprep.subr.mxu0 %v3909_v32 }
 0x160   : > { %3118 = vmatprep.mubr.f32.mxu0 %v3952_v51  ;;  %3139 = vmatpush3.msra.mxu1 %v3917_v59  ;;  %v1211_v51 = vpop.permute.xlu0 %1210 }
 0x161   : > { %3140 = vmatprep.mubr.f32.mxu1 %v1323_v28  ;;  %3159 = vmatpush3.msra.mxu0 %v3909_v32 }
 0x162   : > { %3119 = vmatmul.mubr.f32.gmra.mxu0 %v3964_v16  ;;  %3141 = vmatmul.mubr.f32.vlgmr.msra.gmra.mxu1 %v1333_v46 }
 0x163   : > { %3160 = vmatprep.subr.mxu0 %v3931_v36  ;;  %3180 = vmatprep.subr.mxu1 %v3850_v12 }
 0x164   : > { %3161 = vmatpush3.msra.mxu0 %v3931_v36  ;;  %3181 = vmatpush3.msra.mxu1 %v3850_v12  ;;  %v1201_v26 = vpop.permute.xlu0 %1200 }
 0x165   : > { %3162 = vmatprep.subr.mxu0 %v3949_v48  ;;  %3182 = vmatprep.subr.mxu1 %v3867_v41 }
 0x166   : > { %3121 = vmatprep.mubr.f32.mxu0 %v3991_v50  ;;  %3143 = vmatprep.mubr.f32.mxu1 %v1343_v10 }
 0x167   : > { %3163 = vmatpush3.msra.mxu0 %v3949_v48  ;;  %3183 = vmatpush3.msra.mxu1 %v3867_v41 }
 0x168   : > { %3122 = vmatmul.mubr.f32.gmra.mxu0 %v4000_v6  ;;  %3144 = vmatmul.mubr.f32.gmra.mxu1 %v1353_v17  ;;  %v1191_v5 = vpop.permute.xlu0 %1190 }
 0x169   : > { %3164 = vmatprep.subr.mxu0 %v3973_v25  ;;  %3184 = vmatprep.subr.mxu1 %v3835_v19 }
 0x16a   : > { %3165 = vmatpush3.msra.mxu0 %v3973_v25  ;;  %3185 = vmatpush3.msra.mxu1 %v3835_v19 }
 0x16b   : > { %3166 = vmatprep.subr.mxu0 %v3986_v38  ;;  %3186 = vmatprep.subr.mxu1 %v3842_v22 }
 0x16c   : > { %3146 = vmatprep.mubr.f32.mxu1 %v1363_v30  ;;  %3167 = vmatpush3.msra.mxu0 %v3986_v38 }
 0x16d   : > { %3168 = vmatprep.mubr.f32.mxu0 %v3797_v13  ;;  %3187 = vmatpush3.msra.mxu1 %v3842_v22 }
 0x16e   : > { %3147 = vmatmul.mubr.f32.gmra.mxu1 %v1373_v47  ;;  %3169 = vmatmul.mubr.f32.vlgmr.msra.gmra.mxu0 %v3837_v23 }
 0x16f   : > { %3188 = vmatprep.subr.mxu1 %v3848_v11  ;;  %3149 = vmatprep.mubr.f32.mxu1 %v1383_v14 }
 0x170   : > { %3189 = vmatpush3.msra.mxu1 %v3848_v11  ;;  %3171 = vmatprep.mubr.f32.mxu0 %v3862_v35 }
 0x171   : > { %3190 = vmatprep.subr.mxu1 %v3865_v39 }
 0x172   : > { %3191 = vmatpush3.msra.mxu1 %v3865_v39  ;;  %3172 = vmatmul.mubr.f32.gmra.mxu0 %v3877_v42 }
 0x173   : > { %3150 = vmatmul.mubr.f32.gmra.mxu1 %v1393_v8  ;;  %3192 = vmatprep.subr.mxu1 %v3893_v43 }
 0x174   : > { %3193 = vmatpush3.msra.mxu1 %v3893_v43  ;;  %3174 = vmatprep.mubr.f32.mxu0 %v3900_v57 }
 0x175   : > { %3194 = vmatprep.subr.mxu1 %v3917_v59  ;;  %3196 = vmatprep.mubr.f32.mxu1 %v3797_v13  ;;  %v3463_v13 = vmov 0.0  }
 0x176   : > { %3195 = vmatpush3.msra.mxu1 %v3917_v59  ;;  %3175 = vmatmul.mubr.f32.gmra.mxu0 %v3923_v61 }
 0x177   : > { %3197 = vmatmul.mubr.f32.vlgmr.msra.gmra.mxu1 %v3837_v23  ;;  %3177 = vmatprep.mubr.f32.mxu0 %v3966_v20 }
 0x178   : > { %3199 = vmatprep.mubr.f32.mxu1 %v3862_v35  ;;  %3208 = vmatprep.subr.mxu0 %v3463_v13 }
 0x179   : > { %3227 = vmatprep.subr.mxu1 %v3463_v13 }
 0x17a   : > { %3178 = vmatmul.mubr.f32.gmra.mxu0 %v3979_v33 }
 0x17b   : > { %3200 = vmatmul.mubr.f32.gmra.mxu1 %v3877_v42  ;;  %3224 = vmatprep.mubr.msk.f32.mxu0 %vm3464_vm2, %v3463_v13 }
 0x17c   : > { %3202 = vmatprep.mubr.f32.mxu1 %v3900_v57 }
 0x17f   : > { %3203 = vmatmul.mubr.f32.gmra.mxu1 %v3923_v61  ;;  %v1216_v61 = vpop.permute.xlu1 %1215 }
 0x180   : > { %3205 = vmatprep.mubr.f32.mxu1 %v3966_v20 }
 0x183   : > { %3206 = vmatmul.mubr.f32.gmra.mxu1 %v3979_v33  ;;  %v1206_v17 = vpop.permute.xlu1 %1205 }
 0x184   : > { %3243 = vmatprep.mubr.msk.f32.mxu1 %vm3464_vm2, %v3463_v13 }
 0x187   : > { %v1196_v33 = vpop.permute.xlu1 %1195 }
 0x18b   : > { %v1186_v8 = vpop.permute.xlu1 %1185 }
 0x200   : > { %v3058_v18 = vpop.f32.mrf.mxu0 }
 0x201   : > { %v1338_v9 = vadd.f32 %v3058_v18, %v1191_v5 }
 0x202   : > { %v1327_v28 = vpop.f32.mrf.mxu0 }
 0x203   : > { %v1328_v56 = vadd.f32 %v1327_v28, %v1186_v8 }
 0x205   : > { %v3061_v19 = vpop.f32.mrf.mxu0 }
 0x206   : > { %v1358_v38 = vadd.f32 %v3061_v19, %v1201_v26 }
 0x207   : > { %v1347_v23 = vpop.f32.mrf.mxu0 }
 0x208   : > { %v1348_v58 = vadd.f32 %v1347_v23, %v1196_v33 }
 0x20a   : > { %v3064_v22 = vpop.f32.mrf.mxu0  ;;  %v3086_v11 = vpop.f32.mrf.mxu1 }
 0x20b   : > { %v1378_v47 = vadd.f32 %v3064_v22, %v1211_v51  ;;  %v1515_v21 = vadd.f32 %v3086_v11, %v1338_v9 }
 0x20c   : > { %v1367_v12 = vpop.f32.mrf.mxu0  ;;  %v1508_v52 = vpop.f32.mrf.mxu1 }
 0x20d   : > { %v1368_v6 = vadd.f32 %v1367_v12, %v1206_v17  ;;  %v1509_v12 = vadd.f32 %v1508_v52, %v1328_v56 }
 0x210   : > { %v3067_v35 = vpop.f32.mrf.mxu0  ;;  %v3089_v39 = vpop.f32.mrf.mxu1 }
 0x211   : > { %v1527_v34 = vadd.f32 %v3089_v39, %v1358_v38  ;;  %v1398_v31 = vadd.f32 %v3067_v35, %v1221_v49 }
 0x212   : > { %v1387_v41 = vpop.f32.mrf.mxu0  ;;  %v1520_v40 = vpop.f32.mrf.mxu1 }
 0x213   : > { %v1521_v4 = vadd.f32 %v1520_v40, %v1348_v58  ;;  %v1388_v23 = vadd.f32 %v1387_v41, %v1216_v61 }
 0x216   : > { %v3092_v42 = vpop.f32.mrf.mxu1  ;;  %v3114_v44 = vpop.f32.mrf.mxu0 }
 0x217   : > { %v1539_v45 = vadd.f32 %v3092_v42, %v1378_v47  ;;  %v1646_v42 = vadd.f32 %v3114_v44, %v1515_v21 }
 0x218   : > { %v1532_v60 = vpop.f32.mrf.mxu1  ;;  %v4132_v53 = vpop.f32.mrf.mxu0 }
 0x219   : > { %v1533_v7 = vadd.f32 %v1532_v60, %v1368_v6  ;;  %v1639_v28 = vadd.f32 %v4132_v53, %v1509_v12 }
 0x21c   : > { %v3095_v43 = vpop.f32.mrf.mxu1  ;;  %v3117_v46 = vpop.f32.mrf.mxu0 }
 0x21d   : > { %v1660_v14 = vadd.f32 %v3117_v46, %v1527_v34  ;;  %v1551_v39 = vadd.f32 %v3095_v43, %v1398_v31 }
 0x21e   : > { %v1544_v55 = vpop.f32.mrf.mxu1  ;;  %v1652_v57 = vpop.f32.mrf.mxu0 }
 0x21f   : > { %v1653_v29 = vadd.f32 %v1652_v57, %v1521_v4  ;;  %v1545_v33 = vadd.f32 %v1544_v55, %v1388_v23 }
 0x222   : > { %v3120_v62 = vpop.f32.mrf.mxu0  ;;  %v3142_v32 = vpop.f32.mrf.mxu1 }
 0x223   : > { %v1674_v24 = vadd.f32 %v3120_v62, %v1539_v45  ;;  %v1777_v11 = vadd.f32 %v3142_v32, %v1646_v42 }
 0x224   : > { %v1666_v3 = vpop.f32.mrf.mxu0  ;;  %v4134_v59 = vpop.f32.mrf.mxu1 }
 0x225   : > { %v1667_v51 = vadd.f32 %v1666_v3, %v1533_v7  ;;  %v1769_v52 = vadd.f32 %v4134_v59, %v1639_v28 }
 0x228   : > { %v3123_v36 = vpop.f32.mrf.mxu0  ;;  %v3145_v10 = vpop.f32.mrf.mxu1 }
 0x229   : > { %v1793_v19 = vadd.f32 %v3145_v10, %v1660_v14  ;;  %v1688_v38 = vadd.f32 %v3123_v36, %v1551_v39 }
 0x22a   : > { %v1680_v0 = vpop.f32.mrf.mxu0  ;;  %v1784_v48 = vpop.f32.mrf.mxu1 }
 0x22b   : > { %v1785_v18 = vadd.f32 %v1784_v48, %v1653_v29  ;;  %v1681_v41 = vadd.f32 %v1680_v0, %v1545_v33 }
 0x22e   : > { %v3148_v54 = vpop.f32.mrf.mxu1  ;;  %v3170_v16 = vpop.f32.mrf.mxu0 }
 0x22f   : > { %v1809_v26 = vadd.f32 %v3148_v54, %v1674_v24  ;;  %v1926_v44 = vadd.f32 %v3170_v16, %v1777_v11  ;;  %v2094_v16 = vld [vmem:[%s4379_s5] sm:$0xff] }
 0x230   : > { %v1800_v20 = vpop.f32.mrf.mxu1  ;;  %v1919_v25 = vpop.f32.mrf.mxu0 }
 0x231   : > { %v1801_v35 = vadd.f32 %v1800_v20, %v1667_v51 }
 0x232   : > { %v3173_v27 = vpop.f32.mrf.mxu0 }
 0x233   : > { %v3151_v30 = vpop.f32.mrf.mxu1  ;;  %v1938_v40 = vadd.f32 %v3173_v27, %v1793_v19  ;;  %v1920_v27 = vadd.f32 %v1919_v25, %v1769_v52  ;;  %v2102_v25 = vsel %vm1223_vm1, %v2094_v16, 0  ;;  %v2099_v16 = vpop.permute.xlu0 %2098 }
 0x234   : > { %v1931_v37 = vpop.f32.mrf.mxu0  ;;  %v1825_v43 = vadd.f32 %v3151_v30, %v1688_v38 }
 0x235   : > { %v1816_v63 = vpop.f32.mrf.mxu1  ;;  %v1932_v57 = vadd.f32 %v1931_v37, %v1785_v18 }
 0x236   : > { %v3176_v50 = vpop.f32.mrf.mxu0  ;;  %v1817_v55 = vadd.f32 %v1816_v63, %v1681_v41 }
 0x237   : > { %v3198_v1 = vpop.f32.mrf.mxu1  ;;  %v1950_v60 = vadd.f32 %v3176_v50, %v1809_v26 }
 0x238   : > { %v1943_v15 = vpop.f32.mrf.mxu0  ;;  %v2047_v53 = vadd.f32 %v3198_v1, %v1926_v44  ;;  %v4144_v1 = vand.u32 4294901760, %v2102_v25 }
 0x239   : > { %v2040_v2 = vpop.f32.mrf.mxu1  ;;  %v1944_v3 = vadd.f32 %v1943_v15, %v1801_v35 }
 0x23a   : > { %v3179_v46 = vpop.f32.mrf.mxu0  ;;  %v2041_v30 = vadd.f32 %v2040_v2, %v1920_v27  ;;  %v4156_v8 = vsub.f32 %v2102_v25, %v4144_v1 }
 0x23b   : > { %v3201_v22 = vpop.f32.mrf.mxu1  ;;  %v1962_v36 = vadd.f32 %v3179_v46, %v1825_v43 }
 0x23c   : > { %v2059_v62 = vadd.f32 %v3201_v22, %v1938_v40  ;;  %v1955_v10 = vpop.f32.mrf.mxu0  ;;  %v2179_v26 = vand.u32 4294901760, %v4156_v8 }
 0x23d   : > { %v2052_v17 = vpop.f32.mrf.mxu1  ;;  %v1956_v37 = vadd.f32 %v1955_v10, %v1817_v55 }
 0x23e   : > { %v2053_v48 = vadd.f32 %v2052_v17, %v1932_v57 }
 0x23f   : > { %v3204_v49 = vpop.f32.mrf.mxu1 }
 0x240   : > { %v2071_v61 = vadd.f32 %v3204_v49, %v1950_v60  ;;  %v2180_v60 = vsub.f32 %v4156_v8, %v2179_v26 }
 0x241   : > { %v2064_v54 = vpop.f32.mrf.mxu1 }
 0x242   : > { %3382 = vtanh.f32 %v2071_v61  ;;  %v2065_v20 = vadd.f32 %v2064_v54, %v1944_v3  ;;  %v2181_v3 = vand.u32 4294901760, %v2180_v60 }
 0x243   : > { %3384 = vtanh.f32 %v2059_v62  ;;  %v3207_v32 = vpop.f32.mrf.mxu1 }
 0x244   : > { %3386 = vtanh.f32 %v2065_v20  ;;  %v2083_v0 = vadd.f32 %v3207_v32, %v1962_v36 }
 0x245   : > { %3388 = vtanh.f32 %v2053_v48  ;;  %v2076_v47 = vpop.f32.mrf.mxu1 }
 0x246   : > { %3390 = vtanh.f32 %v2083_v0  ;;  %v2077_v59 = vadd.f32 %v2076_v47, %v1956_v37 }
 0x247   : > { %3392 = vtanh.f32 %v2047_v53 }
 0x248   : > { %3394 = vtanh.f32 %v2077_v59 }
 0x249   : > { %3396 = vtanh.f32 %v2041_v30 }
 0x24f   : > { %v3383_v63 = vpop.eup %3382 }
 0x250   : > { %v3385_v50 = vpop.eup %3384  ;;  %v4142_v58 = vand.u32 4294901760, %v3383_v63 }
 0x251   : > { %v3387_v34 = vpop.eup %3386  ;;  %v4150_v14 = vand.u32 4294901760, %v3385_v50 }
 0x252   : > { %v3389_v5 = vpop.eup %3388  ;;  %v4146_v6 = vand.u32 4294901760, %v3387_v34  ;;  %v4153_v15 = vsub.f32 %v3383_v63, %v4142_v58 }
 0x253   : > { %v3391_v45 = vpop.eup %3390  ;;  %v4164_v56 = vand.u32 4294901760, %v3389_v5  ;;  %v4179_v39 = vsub.f32 %v3385_v50, %v4150_v14 }
 0x254   : > { %v3393_v9 = vpop.eup %3392  ;;  %v4148_v4 = vand.u32 4294901760, %v3391_v45  ;;  %v4167_v21 = vsub.f32 %v3387_v34, %v4146_v6  ;;  %v2220_v23 = vand.u32 4294901760, %v4153_v15 }
 0x255   : > { %v3395_v2 = vpop.eup %3394  ;;  %v4170_v29 = vand.u32 4294901760, %v3393_v9  ;;  %v4192_v40 = vsub.f32 %v3389_v5, %v4164_v56  ;;  %v2234_v35 = vand.u32 4294901760, %v4179_v39 }
 0x256   : > { %v3397_v31 = vpop.eup %3396  ;;  %3209 = vmatpush3.msra.mxu0 %v4148_v4  ;;  %v4159_v7 = vand.u32 4294901760, %v3395_v2  ;;  %v4162_v24 = vsub.f32 %v3391_v45, %v4148_v4  ;;  %v2227_v18 = vand.u32 4294901760, %v4167_v21  ;;  %v2221_v38 = vsub.f32 %v4153_v15, %v2220_v23 }
 0x257   : > { %3210 = vmatprep.subr.mxu0 %v3463_v13  ;;  %v4182_v51 = vand.u32 4294901760, %v3397_v31  ;;  %v4196_v46 = vsub.f32 %v3393_v9, %v4170_v29  ;;  %v2241_v57 = vand.u32 4294901760, %v4192_v40  ;;  %v2235_v41 = vsub.f32 %v4179_v39, %v2234_v35 }
 0x258   : > { %3211 = vmatpush3.msra.mxu0 %v4159_v7  ;;  %v2206_v19 = vand.u32 4294901760, %v4162_v24  ;;  %v4175_v22 = vsub.f32 %v3395_v2, %v4159_v7  ;;  %v2228_v11 = vsub.f32 %v4167_v21, %v2227_v18  ;;  %v2222_v49 = vand.u32 4294901760, %v2221_v38 }
 0x259   : > { %3212 = vmatprep.subr.mxu0 %v3463_v13  ;;  %v4216_v62 = vsub.f32 %v3397_v31, %v4182_v51  ;;  %v2248_v43 = vand.u32 4294901760, %v4196_v46  ;;  %v2242_v52 = vsub.f32 %v4192_v40, %v2241_v57  ;;  %v2236_v10 = vand.u32 4294901760, %v2235_v41 }
 0x25a   : > { %3213 = vmatpush3.msra.mxu0 %v4142_v58  ;;  %v2207_v12 = vsub.f32 %v4162_v24, %v2206_v19  ;;  %v2213_v42 = vand.u32 4294901760, %v4175_v22  ;;  %v2229_v61 = vand.u32 4294901760, %v2228_v11 }
 0x25b   : > { %3214 = vmatprep.subr.mxu0 %v3463_v13  ;;  %v2255_v44 = vand.u32 4294901760, %v4216_v62  ;;  %v2249_v48 = vsub.f32 %v4196_v46, %v2248_v43  ;;  %v2243_v54 = vand.u32 4294901760, %v2242_v52 }
 0x25c   : > { %3215 = vmatpush3.msra.mxu0 %v4146_v6  ;;  %v2208_v17 = vand.u32 4294901760, %v2207_v12  ;;  %v2214_v33 = vsub.f32 %v4175_v22, %v2213_v42 }
 0x25d   : > { %3216 = vmatprep.subr.mxu0 %v3463_v13  ;;  %v2256_v55 = vsub.f32 %v4216_v62, %v2255_v44  ;;  %v2250_v36 = vand.u32 4294901760, %v2249_v48 }
 0x25e   : > { %3217 = vmatpush3.msra.mxu0 %v4150_v14  ;;  %3228 = vmatpush3.msra.mxu1 %v2208_v17  ;;  %v2215_v28 = vand.u32 4294901760, %v2214_v33 }
 0x25f   : > { %3218 = vmatprep.subr.mxu0 %v3463_v13  ;;  %3229 = vmatprep.subr.mxu1 %v3463_v13  ;;  %v2257_v20 = vand.u32 4294901760, %v2256_v55 }
 0x260   : > { %3219 = vmatpush3.msra.mxu0 %v4164_v56  ;;  %3230 = vmatpush3.msra.mxu1 %v2215_v28 }
 0x261   : > { %3220 = vmatprep.subr.mxu0 %v3463_v13  ;;  %3231 = vmatprep.subr.mxu1 %v3463_v13 }
 0x262   : > { %3221 = vmatpush3.msra.mxu0 %v4170_v29  ;;  %3232 = vmatpush3.msra.mxu1 %v2222_v49 }
 0x263   : > { %3222 = vmatprep.subr.mxu0 %v3463_v13  ;;  %3233 = vmatprep.subr.mxu1 %v3463_v13 }
 0x264   : > { %3223 = vmatpush3.msra.mxu0 %v4182_v51  ;;  %3234 = vmatpush3.msra.mxu1 %v2229_v61 }
 0x265   : > { %3225 = vmatmul.mubr.f32.vlgmr.msra.gmra.mxu0 %v2181_v3  ;;  %3235 = vmatprep.subr.mxu1 %v3463_v13 }
 0x266   : > { %3246 = vmatprep.subr.mxu0 %v3463_v13  ;;  %3236 = vmatpush3.msra.mxu1 %v2236_v10 }
 0x267   : > { %3247 = vmatpush3.msra.mxu0 %v4162_v24  ;;  %3237 = vmatprep.subr.mxu1 %v3463_v13 }
 0x268   : > { %3248 = vmatprep.subr.mxu0 %v3463_v13  ;;  %3238 = vmatpush3.msra.mxu1 %v2243_v54 }
 0x269   : > { %3249 = vmatpush3.msra.mxu0 %v4175_v22  ;;  %3239 = vmatprep.subr.mxu1 %v3463_v13 }
 0x26a   : > { %3250 = vmatprep.subr.mxu0 %v3463_v13  ;;  %3240 = vmatpush3.msra.mxu1 %v2250_v36 }
 0x26b   : > { %3251 = vmatpush3.msra.mxu0 %v4153_v15  ;;  %3241 = vmatprep.subr.mxu1 %v3463_v13 }
 0x26c   : > { %3252 = vmatprep.subr.mxu0 %v3463_v13  ;;  %3242 = vmatpush3.msra.mxu1 %v2257_v20 }
 0x26d   : > { %3253 = vmatpush3.msra.mxu0 %v4167_v21  ;;  %3244 = vmatmul.mubr.f32.vlgmr.msra.gmra.mxu1 %v4144_v1 }
 0x26e   : > { %3254 = vmatprep.subr.mxu0 %v3463_v13  ;;  %3265 = vmatprep.subr.mxu1 %v3463_v13 }
 0x26f   : > { %3255 = vmatpush3.msra.mxu0 %v4179_v39  ;;  %3266 = vmatpush3.msra.mxu1 %v4148_v4 }
 0x270   : > { %3256 = vmatprep.subr.mxu0 %v3463_v13  ;;  %3267 = vmatprep.subr.mxu1 %v3463_v13 }
 0x271   : > { %3257 = vmatpush3.msra.mxu0 %v4192_v40  ;;  %3268 = vmatpush3.msra.mxu1 %v4159_v7 }
 0x272   : > { %3258 = vmatprep.subr.mxu0 %v3463_v13  ;;  %3269 = vmatprep.subr.mxu1 %v3463_v13 }
 0x273   : > { %3259 = vmatpush3.msra.mxu0 %v4196_v46  ;;  %3270 = vmatpush3.msra.mxu1 %v4142_v58 }
 0x274   : > { %3260 = vmatprep.subr.mxu0 %v3463_v13  ;;  %3271 = vmatprep.subr.mxu1 %v3463_v13 }
 0x275   : > { %3261 = vmatpush3.msra.mxu0 %v4216_v62  ;;  %3262 = vmatprep.mubr.msk.f32.mxu0 %vm3464_vm2, %v3463_v13 }
 0x276   : > { %3272 = vmatpush3.msra.mxu1 %v4146_v6  ;;  %3263 = vmatmul.mubr.f32.vlgmr.msra.gmra.mxu0 %v4156_v8 }
 0x277   : > { %3273 = vmatprep.subr.mxu1 %v3463_v13  ;;  %3284 = vmatprep.subr.mxu0 %v3463_v13 }
 0x278   : > { %3274 = vmatpush3.msra.mxu1 %v4150_v14  ;;  %3285 = vmatpush3.msra.mxu0 %v2206_v19 }
 0x279   : > { %3275 = vmatprep.subr.mxu1 %v3463_v13  ;;  %3286 = vmatprep.subr.mxu0 %v3463_v13 }
 0x27a   : > { %3276 = vmatpush3.msra.mxu1 %v4164_v56  ;;  %3287 = vmatpush3.msra.mxu0 %v2213_v42 }
 0x27b   : > { %3277 = vmatprep.subr.mxu1 %v3463_v13  ;;  %3288 = vmatprep.subr.mxu0 %v3463_v13 }
 0x27c   : > { %3278 = vmatpush3.msra.mxu1 %v4170_v29  ;;  %3289 = vmatpush3.msra.mxu0 %v2220_v23 }
 0x27d   : > { %3279 = vmatprep.subr.mxu1 %v3463_v13  ;;  %3290 = vmatprep.subr.mxu0 %v3463_v13 }
 0x27e   : > { %3280 = vmatpush3.msra.mxu1 %v4182_v51  ;;  %3281 = vmatprep.mubr.msk.f32.mxu1 %vm3464_vm2, %v3463_v13 }
 0x27f   : > { %3291 = vmatpush3.msra.mxu0 %v2227_v18  ;;  %3282 = vmatmul.mubr.f32.vlgmr.msra.gmra.mxu1 %v2179_v26 }
 0x280   : > { %3292 = vmatprep.subr.mxu0 %v3463_v13  ;;  %3303 = vmatprep.subr.mxu1 %v3463_v13 }
 0x281   : > { %3293 = vmatpush3.msra.mxu0 %v2234_v35  ;;  %3304 = vmatpush3.msra.mxu1 %v4148_v4 }
 0x282   : > { %3294 = vmatprep.subr.mxu0 %v3463_v13  ;;  %3305 = vmatprep.subr.mxu1 %v3463_v13 }
 0x283   : > { %3295 = vmatpush3.msra.mxu0 %v2241_v57  ;;  %3306 = vmatpush3.msra.mxu1 %v4159_v7 }
 0x284   : > { %3296 = vmatprep.subr.mxu0 %v3463_v13  ;;  %3307 = vmatprep.subr.mxu1 %v3463_v13 }
 0x285   : > { %3297 = vmatpush3.msra.mxu0 %v2248_v43  ;;  %3308 = vmatpush3.msra.mxu1 %v4142_v58 }
 0x286   : > { %3298 = vmatprep.subr.mxu0 %v3463_v13  ;;  %3309 = vmatprep.subr.mxu1 %v3463_v13 }
 0x287   : > { %3299 = vmatpush3.msra.mxu0 %v2255_v44  ;;  %3300 = vmatprep.mubr.msk.f32.mxu0 %vm3464_vm2, %v3463_v13 }
 0x288   : > { %3310 = vmatpush3.msra.mxu1 %v4146_v6  ;;  %3301 = vmatmul.mubr.f32.vlgmr.msra.gmra.mxu0 %v4144_v1 }
 0x289   : > { %3311 = vmatprep.subr.mxu1 %v3463_v13  ;;  %3319 = vmatprep.mubr.msk.f32.mxu1 %vm3464_vm2, %v3463_v13 }
 0x28a   : > { %3312 = vmatpush3.msra.mxu1 %v4150_v14 }
 0x28b   : > { %3313 = vmatprep.subr.mxu1 %v3463_v13 }
 0x28c   : > { %3314 = vmatpush3.msra.mxu1 %v4164_v56 }
 0x28d   : > { %3315 = vmatprep.subr.mxu1 %v3463_v13 }
 0x28e   : > { %3316 = vmatpush3.msra.mxu1 %v4170_v29 }
 0x28f   : > { %3317 = vmatprep.subr.mxu1 %v3463_v13 }
 0x290   : > { %3318 = vmatpush3.msra.mxu1 %v4182_v51 }
 0x291   : > { %3320 = vmatmul.mubr.f32.vlgmr.msra.gmra.mxu1 %v4144_v1 }
 0x325   : > { %v2183_v27 = vpop.f32.mrf.mxu0 }
 0x326   : > { %v2184_v25 = vadd.f32 %v2183_v27, %v2099_v16 }
 0x327   : > { %v3226_v53 = vpop.f32.mrf.mxu0 }
 0x32d   : > { %v2294_v32 = vpop.f32.mrf.mxu1 }
 0x32e   : > { %v2295_v50 = vadd.f32 %v2294_v32, %v2184_v25 }
 0x32f   : > { %v3245_v37 = vpop.f32.mrf.mxu1 }
 0x336   : > { %v2382_v0 = vpop.f32.mrf.mxu0 }
 0x337   : > { %v2383_v13 = vadd.f32 %v2382_v0, %v2295_v50 }
 0x338   : > { %v3264_v30 = vpop.f32.mrf.mxu0 }
 0x33f   : > { %v2463_v47 = vpop.f32.mrf.mxu1 }
 0x340   : > { %v2464_v34 = vadd.f32 %v2463_v47, %v2383_v13 }
 0x341   : > { %v3283_v59 = vpop.f32.mrf.mxu1 }
 0x348   : > { %v2558_v63 = vpop.f32.mrf.mxu0 }
 0x349   : > { %v2559_v5 = vadd.f32 %v2558_v63, %v2464_v34 }
 0x34a   : > { %v3302_v58 = vpop.f32.mrf.mxu0 }
 0x351   : > { %v2637_v1 = vpop.f32.mrf.mxu1 }
 0x352   : > { %v2638_v6 = vadd.f32 %v2637_v1, %v2559_v5 }
 0x353   : > { %v3321_v45 = vpop.f32.mrf.mxu1 }
 0x354   : > { %3398 = vtanh.f32 %v2638_v6 }
 0x361   : > { %v3399_v9 = vpop.eup %3398 }
 0x362   : > { %2642 = vst [vmem:[%s315_s14] sm:$0xff] %v3399_v9 }
 0x363   : > { %3413 = shalt.err (!%p3410_p5)
}
 0x364   : > { %s3414_s29 = scalar_lea.hbm %s4337_s18, 128  ;;  %s3418_s9 = scalar_lea.hbm %s4381_s7, 256 }
 0x365   : > { %p3415_p7 = scmp.ne.s32.totalorder %s4337_s18, %s3414_s29  ;;  %p3419_p12 = scmp.lt.s32.totalorder %s4337_s18, %s4381_s7 }
 0x366   : > { %p3420_p13 = scmp.lt.s32.totalorder %s3418_s9, %s3414_s29 }
 0x367   : > { %p3416_p10 = pnand %p3415_p7, %p3544_p6 }
 0x368   : > { %p3421_p0 = por %p3420_p13, %p3419_p12 }
 0x369   : > { %p3417_p11 = pneg %p3416_p10 }
 0x36b   : > { %p3422_p1 = pnand %p3421_p0, %p3417_p11 }
 0x36d   : > { %3425 = shalt.err (!%p3422_p1)
}
 0x36e   : > { %3322 = dma.vmem_to_hbm [thread:$0]  (%p3544_p6), %s2658_s15, 128, %s4337_s18, %s2644_s19  }
 0x36f PF: > { %s2669_s16 = sand.u32 1, %s3448_s24   ;;  %p3325_p2 = pnand %p2724_p9, %p3548_p8 }
 0x370   : > { %s2670_s17 = scalar_lea.sflag [#allocation4], %s2669_s16 }
 0x371   : > { %p3326_p3 = pneg %p3325_p2 }
 0x373   : > { %3443 = dma.done.wait (%p3326_p3), %s2670_s17, 128  }
 0x374   : > { %3445 = vsyncadd (%p3326_p3), %s2670_s17, 4294967168  ;;  %p17_p4 = scmp.ge.s32.totalorder %s3529_s30, 4   ;;  %s4384_s24 = smov %s3452_s25 }
 0x375   : > { %s4385_s25 = smov %s3456_s26  ;;  %s4386_s26 = smov %s3542_s10 }
 0x376   : > { %s4387_s27 = smov %s3529_s30  ;;  %19 = sbr.rel (!%p17_p4) target bundleno = 3 (0x3), region = 126 }
 0x37b   :  { %2675 = vsyncpa [#allocation4], 1 }
 0x37c   :  { %2677 = vsyncpa [#allocation4 + $0x1], 1 }

</bundles_post_ra>
